<compile_context>
chip_gen: v6e
topology: v6e:2x2x1
jax: 0.10.0
libtpu: 0.0.40
codegen_flags: <defaults>
</compile_context>

<pallas_src>
import functools
import math

import jax
import jax.numpy as jnp
from jax.experimental import pallas as pl
from jax.experimental.pallas import tpu as pltpu

LANE = 128   # padded hidden / weight lane width
SLAB = 144   # per-layer slab rows: 128 weight rows + 1 bias row + 15 pad
             # (144 is a multiple of 16 -> clean bf16 sublane tiling)


def _round_up(x, m):
    return (x + m - 1) // m * m


def actor_kernel(x_ref, p_ref, out_ref, *, sdp, action_dim):
    """x_ref: (TB, sdp) f32; p_ref: (3, SLAB, LANE) bf16; out_ref: (TB, action_dim) f32."""
    f32 = jnp.float32
    bf16 = jnp.bfloat16

    # fc1: (TB, sdp) @ (sdp, 128) -- only the real input rows of the slab.
    s0 = p_ref[0]
    h = jnp.dot(x_ref[...].astype(bf16), s0[:sdp, :], preferred_element_type=f32)
    h = jnp.maximum(h + s0[LANE:LANE + 1, :].astype(f32), 0.0)

    # fc2: padded hidden lanes are exactly zero (zero weight cols + zero bias).
    s1 = p_ref[1]
    h = jnp.dot(h.astype(bf16), s1[:LANE, :], preferred_element_type=f32)
    h = jnp.maximum(h + s1[LANE:LANE + 1, :].astype(f32), 0.0)

    # fc3 + tanh; slice to the real action lanes before the EUP tanh / store.
    s2 = p_ref[2]
    h = jnp.dot(h.astype(bf16), s2[:LANE, :], preferred_element_type=f32)
    h = h + s2[LANE:LANE + 1, :].astype(f32)
    out_ref[...] = jnp.tanh(h[:, :action_dim])


def pack_actor_params(params):
    """Pack (in,out)-layout weights + (1,out) biases into one (3, 144, 128) bf16 blob.

    Rows 0..127 hold the zero-padded weight, row 128 holds the zero-padded
    bias, rows 129..143 are zero padding (bf16 sublane alignment)."""
    def slab(w, b):
        s = jnp.zeros((SLAB, LANE), jnp.bfloat16)
        s = s.at[: w.shape[0], : w.shape[1]].set(w.astype(jnp.bfloat16))
        s = s.at[LANE, : b.shape[-1]].set(b.reshape(-1).astype(jnp.bfloat16))
        return s

    return jnp.stack([
        slab(params["w1"], params["b1"]),
        slab(params["w2"], params["b2"]),
        slab(params["w3"], params["b3"]),
    ])


def _choose_batch_tiling(B):
    """Pick (TB, B_pad, n_tiles): TB multiple of 8, cap 1024 rows, grid >= 2
    once B >= 128 (v7x dual-TC), padding at most a few rows."""
    B8 = _round_up(B, 8)
    if B8 < 128:
        return B8, B8, 1           # tiny batch: per-step overhead dominates
    n = max(2, -(-B8 // 1024))     # at least 2 tiles, each <= ~1024 rows
    tb = _round_up(-(-B8 // n), 8)
    n = -(-B8 // tb)
    return tb, tb * n, n


@functools.partial(jax.jit, static_argnames=("action_dim",))
def actor_forward(state, packed_params, action_dim):
    """state: (B, state_dim) f32; packed_params: (3, 144, 128) bf16 blob."""
    B, state_dim = state.shape
    assert state_dim <= LANE and action_dim <= LANE

    TB, B_pad, n_tiles = _choose_batch_tiling(B)
    SDP = _round_up(state_dim, 8)

    # Minimal pad only (a few rows / columns of the *narrow* state), not a
    # full 128-lane slab. Skipped entirely when shapes already line up.
    if (B_pad, SDP) != (B, state_dim):
        x = jnp.zeros((B_pad, SDP), jnp.float32).at[:B, :state_dim].set(
            state.astype(jnp.float32))
    else:
        x = state.astype(jnp.float32)

    cost = pl.CostEstimate(
        flops=2 * B_pad * (SDP * LANE + LANE * LANE + LANE * LANE),
        transcendentals=B_pad * action_dim,
        bytes_accessed=int(x.size * 4 + packed_params.size * 2
                           + B_pad * action_dim * 4),
    )

    out = pl.pallas_call(
        functools.partial(actor_kernel, sdp=SDP, action_dim=action_dim),
        out_shape=jax.ShapeDtypeStruct((B_pad, action_dim), jnp.float32),
        grid=(n_tiles,),
        in_specs=[
            pl.BlockSpec((TB, SDP), lambda i: (i, 0)),
            # Constant index_map: params fetched once, VMEM-resident after.
            pl.BlockSpec((3, SLAB, LANE), lambda i: (0, 0, 0)),
        ],
        out_specs=pl.BlockSpec((TB, action_dim), lambda i: (i, 0)),
        compiler_params=pltpu.CompilerParams(
            dimension_semantics=("parallel",),
        ),
        cost_estimate=cost,
    )(x, packed_params)

    return out[:B]


def init_actor_params(key, state_dim, action_dim, hidden=64):
    """PyTorch nn.Linear-style init (U[-1/sqrt(fan_in), 1/sqrt(fan_in)]).

    Weights stored transposed to (in_features, out_features)."""
    keys = jax.random.split(key, 6)

    def linear(kw, kb, fan_in, fan_out):
        bound = 1.0 / math.sqrt(fan_in)
        w = jax.random.uniform(kw, (fan_in, fan_out), jnp.float32, -bound, bound)
        b = jax.random.uniform(kb, (1, fan_out), jnp.float32, -bound, bound)
        return w, b

    w1, b1 = linear(keys[0], keys[1], state_dim, hidden)
    w2, b2 = linear(keys[2], keys[3], hidden, hidden)
    w3, b3 = linear(keys[4], keys[5], hidden, action_dim)
    return {"w1": w1, "b1": b1, "w2": w2, "b2": b2, "w3": w3, "b3": b3}


def actor_forward_ref(state, params):
    """Pure-JAX f32 reference for correctness check."""
    h1 = jnp.maximum(state @ params["w1"] + params["b1"], 0.0)
    h2 = jnp.maximum(h1 @ params["w2"] + params["b2"], 0.0)
    return jnp.tanh(h2 @ params["w3"] + params["b3"])


if __name__ == "__main__":
    key = jax.random.PRNGKey(0)
    k_params, k_state = jax.random.split(key)

    batch, state_dim, action_dim = 256, 16, 4
    params = init_actor_params(k_params, state_dim, action_dim)
    packed = pack_actor_params(params)               # pack/pad once, reuse per call
    state = jax.random.normal(k_state, (batch, state_dim), jnp.float32)

    out = actor_forward(state, packed, action_dim)
    out = jax.block_until_ready(out)

    ref = actor_forward_ref(state, params)
    assert out.shape == (batch, action_dim)
    # bf16 weights on the MXU (f32 accumulate): small, bounded numeric delta
    # vs the pure-f32 reference.
    assert jnp.allclose(out, ref, atol=2e-2, rtol=2e-2), "mismatch vs JAX reference"

    print("KERNEL_OK")
</pallas_src>

<mosaic_0001>
module attributes {stable_mosaic.version = 11 : i64} {
  func.func @actor_kernel(%arg0: i32, %arg1: memref<128x16xf32, #tpu.memory_space<vmem>>, %arg2: memref<3x144x128xbf16, #tpu.memory_space<vmem>>, %arg3: memref<128x4xf32, #tpu.memory_space<vmem>>) attributes {dimension_semantics = [#tpu.dimension_semantics<parallel>], iteration_bounds = array<i64: 2>, scalar_prefetch = 0 : i64, scratch_operands = 0 : i64, tpu.core_type = #tpu.core_type<tc>, window_params = [{transform_indices = @transform_0, window_bounds = array<i64: 128, 16>}, {pipeline_mode = #tpu.pipeline_mode<synchronous>, transform_indices = @transform_1, window_bounds = array<i64: 3, 144, 128>}, {transform_indices = @transform_2, window_bounds = array<i64: 128, 4>}]} {
    %c0 = arith.constant 0 : index
    %c0_0 = arith.constant 0 : index
    %c0_1 = arith.constant 0 : index
    %0 = vector.load %arg2[%c0, %c0_0, %c0_1] : memref<3x144x128xbf16, #tpu.memory_space<vmem>>, vector<1x144x128xbf16>
    %1 = vector.shape_cast %0 : vector<1x144x128xbf16> to vector<144x128xbf16>
    %c0_2 = arith.constant 0 : index
    %c0_3 = arith.constant 0 : index
    %2 = vector.load %arg1[%c0_2, %c0_3] : memref<128x16xf32, #tpu.memory_space<vmem>>, vector<128x16xf32>
    %3 = arith.truncf %2 : vector<128x16xf32> to vector<128x16xbf16>
    %4 = vector.extract_strided_slice %1 {offsets = [0, 0], sizes = [16, 128], strides = [1, 1]} : vector<144x128xbf16> to vector<16x128xbf16>
    %cst = arith.constant dense<0.000000e+00> : vector<128x128xf32>
    %5 = tpu.matmul %3, %4, %cst {dimension_numbers = #tpu.dot_dimension_numbers<[1], [0], [0], [1], [0, 0, 1, 1], [], []>} : vector<128x16xbf16>, vector<16x128xbf16>, vector<128x128xf32> -> vector<128x128xf32>
    %6 = vector.extract_strided_slice %1 {offsets = [128, 0], sizes = [1, 128], strides = [1, 1]} : vector<144x128xbf16> to vector<1x128xbf16>
    %7 = arith.extf %6 : vector<1x128xbf16> to vector<1x128xf32>
    %8 = vector.broadcast %7 : vector<1x128xf32> to vector<128x128xf32>
    %9 = arith.addf %5, %8 : vector<128x128xf32>
    %cst_4 = arith.constant 0.000000e+00 : f32
    %10 = vector.broadcast %cst_4 : f32 to vector<128x128xf32>
    %11 = arith.maximumf %9, %10 : vector<128x128xf32>
    %c1 = arith.constant 1 : index
    %c0_5 = arith.constant 0 : index
    %c0_6 = arith.constant 0 : index
    %12 = vector.load %arg2[%c1, %c0_5, %c0_6] : memref<3x144x128xbf16, #tpu.memory_space<vmem>>, vector<1x144x128xbf16>
    %13 = vector.shape_cast %12 : vector<1x144x128xbf16> to vector<144x128xbf16>
    %14 = arith.truncf %11 : vector<128x128xf32> to vector<128x128xbf16>
    %15 = vector.extract_strided_slice %13 {offsets = [0, 0], sizes = [128, 128], strides = [1, 1]} : vector<144x128xbf16> to vector<128x128xbf16>
    %cst_7 = arith.constant dense<0.000000e+00> : vector<128x128xf32>
    %16 = tpu.matmul %14, %15, %cst_7 {dimension_numbers = #tpu.dot_dimension_numbers<[1], [0], [0], [1], [0, 0, 1, 1], [], []>} : vector<128x128xbf16>, vector<128x128xbf16>, vector<128x128xf32> -> vector<128x128xf32>
    %17 = vector.extract_strided_slice %13 {offsets = [128, 0], sizes = [1, 128], strides = [1, 1]} : vector<144x128xbf16> to vector<1x128xbf16>
    %18 = arith.extf %17 : vector<1x128xbf16> to vector<1x128xf32>
    %19 = vector.broadcast %18 : vector<1x128xf32> to vector<128x128xf32>
    %20 = arith.addf %16, %19 : vector<128x128xf32>
    %cst_8 = arith.constant 0.000000e+00 : f32
    %21 = vector.broadcast %cst_8 : f32 to vector<128x128xf32>
    %22 = arith.maximumf %20, %21 : vector<128x128xf32>
    %c2 = arith.constant 2 : index
    %c0_9 = arith.constant 0 : index
    %c0_10 = arith.constant 0 : index
    %23 = vector.load %arg2[%c2, %c0_9, %c0_10] : memref<3x144x128xbf16, #tpu.memory_space<vmem>>, vector<1x144x128xbf16>
    %24 = vector.shape_cast %23 : vector<1x144x128xbf16> to vector<144x128xbf16>
    %25 = arith.truncf %22 : vector<128x128xf32> to vector<128x128xbf16>
    %26 = vector.extract_strided_slice %24 {offsets = [0, 0], sizes = [128, 128], strides = [1, 1]} : vector<144x128xbf16> to vector<128x128xbf16>
    %cst_11 = arith.constant dense<0.000000e+00> : vector<128x128xf32>
    %27 = tpu.matmul %25, %26, %cst_11 {dimension_numbers = #tpu.dot_dimension_numbers<[1], [0], [0], [1], [0, 0, 1, 1], [], []>} : vector<128x128xbf16>, vector<128x128xbf16>, vector<128x128xf32> -> vector<128x128xf32>
    %28 = vector.extract_strided_slice %24 {offsets = [128, 0], sizes = [1, 128], strides = [1, 1]} : vector<144x128xbf16> to vector<1x128xbf16>
    %29 = arith.extf %28 : vector<1x128xbf16> to vector<1x128xf32>
    %30 = vector.broadcast %29 : vector<1x128xf32> to vector<128x128xf32>
    %31 = arith.addf %27, %30 : vector<128x128xf32>
    %32 = vector.extract_strided_slice %31 {offsets = [0, 0], sizes = [128, 4], strides = [1, 1]} : vector<128x128xf32> to vector<128x4xf32>
    %33 = math.tanh %32 : vector<128x4xf32>
    %c0_12 = arith.constant 0 : index
    %c0_13 = arith.constant 0 : index
    %34 = vector.load %arg3[%c0_12, %c0_13] : memref<128x4xf32, #tpu.memory_space<vmem>>, vector<128x4xf32>
    tpu.vector_store %arg3[%c0_12, %c0_13], %33 {strides = array<i32>} : memref<128x4xf32, #tpu.memory_space<vmem>>, vector<128x4xf32>,
    return
  }
  func.func @transform_0(%arg0: i32) -> (i32, i32) {
    %c0_i32 = arith.constant 0 : i32
    %c0_i32_0 = arith.constant 0 : i32
    return %arg0, %c0_i32 : i32, i32
  }
  func.func @transform_1(%arg0: i32) -> (i32, i32, i32) {
    %c0_i32 = arith.constant 0 : i32
    %c0_i32_0 = arith.constant 0 : i32
    %c0_i32_1 = arith.constant 0 : i32
    %c0_i32_2 = arith.constant 0 : i32
    return %c0_i32, %c0_i32_0, %c0_i32_1 : i32, i32, i32
  }
  func.func @transform_2(%arg0: i32) -> (i32, i32) {
    %c0_i32 = arith.constant 0 : i32
    %c0_i32_0 = arith.constant 0 : i32
    return %arg0, %c0_i32 : i32, i32
  }
}

</mosaic_0001>

<bundles_post_ra>
// kernel: actor_forward.1
= control target key start
LH: loop header
LB: loop body
LE: loop exit
PB: predicated region body
PF: predicated region fallthrough
CT: control target
= control target key end

     0   :  { %s1054_s9 = smov 0   ;;  %s1222_s0 = inlined_call_operand.vmem [shape: f32[256,16], index: 0, kind: input, shape index: {}]   ;;  %s1223_s1 = inlined_call_operand.vmem [shape: bf16[3,144,128], index: 1, kind: input, shape index: {}]   ;;  %s1224_s2 = inlined_call_operand.vmem [shape: f32[256,4], index: 2, kind: output, shape index: {}]  }
   0x1 LB: > { %s781_s10 = sadd.s32 4294967295, %s1037_s9   ;;  %p785_p0 = scmp.ge.s32.totalorder %s1037_s9, 1  ;;  %s1037_s9 = sphi %s1054_s9, %s12_s9  }
   0x2   : > { %p113_p1 = scmp.lt.s32.totalorder %s1037_s9, 3 }
   0x4   : > { %p114_p2 = pnand %p785_p0, %p113_p1 }
   0x5   : > { %s786_s13 = sshll.u32 (!%p114_p2), %s781_s10, 4 }
   0x6   : > { %117 = sbr.rel (%p114_p2) target bundleno = 670 (0x29e), region = 28  ;;  %p136_p3 = scmp.lt.s32.totalorder (!%p114_p2), %s786_s13, 31 }
   0xb   : > { %v982_v0 = vld [vmem:[%s1223_s1] sm:$0xff]   ;;  %s1226_s13 = smov (!%p136_p3, %s786_s13), 31  ;;  %v984_v2 = vld [vmem:[%s1223_s1 + $0x78] sm:$0xff]   ;;  %v985_v3 = vld [vmem:[%s1223_s1 + $0x70] sm:$0xff]   ;;  %vm186_vm0 = vcmask 130048   ;;  %v176_v38 = vlaneseq  ;;  %vm708_vm1 = vcmask 31744  }
   0xc   : > { %892 = vmatprep.subr.bf16.mxu0 %v982_v0  ;;  %v983_v1 = vld [vmem:[%s1223_s1 + $0x80] sm:$0xff]   ;;  %s787_s18 = sshll.u32 %s1226_s13, 3  ;;  %v986_v13 = vld [vmem:[%s1223_s1 + $0x68] sm:$0xff]   ;;  %v988_v30 = vld [vmem:[%s1223_s1 + $0x58] sm:$0xff]  }
   0xd   : > { %893 = vmatpush3.bf16.msra.mxu0 %v982_v0  ;;  %910 = vmatprep.subr.bf16.mxu1 %v983_v1  ;;  %s1079_s21 = scalar_lea.vmem %s1222_s0, %s787_s18  ;;  %v987_v18 = vld [vmem:[%s1223_s1 + $0x60] sm:$0xff]   ;;  %v989_v31 = vld [vmem:[%s1223_s1 + $0x50] sm:$0xff]   ;;  %v990_v32 = vld [vmem:[%s1223_s1 + $0x48] sm:$0xff]   ;;  %v177_v39 = vshrl.u32 %v176_v38, 7  ;;  %s1176_s3 = scalar_lea.vmem %s1224_s2, %s787_s18 }
   0xe   : > { %911 = vmatpush3.bf16.msra.mxu1 %v983_v1  ;;  %v151_v4 = vld [vmem:[%s1079_s21] sm:$0xff]  ;;  %v152_v5 = vld [vmem:[%s1079_s21 + $0x8] sm:$0xff]  ;;  %v153_v6 = vld [vmem:[%s1079_s21 + $0x10] sm:$0xff] }
   0xf   : > { %912 = vmatprep.subr.bf16.mxu1 %v984_v2  ;;  %v167_v7 = vpack.c.bf16 %v152_v5, %v151_v4  ;;  %v154_v8 = vld [vmem:[%s1079_s21 + $0x18] sm:$0xff]  ;;  %v155_v9 = vld [vmem:[%s1079_s21 + $0x20] sm:$0xff]  ;;  %v156_v10 = vld [vmem:[%s1079_s21 + $0x28] sm:$0xff]  ;;  %v1144_v42 = vsub.s32 0, %v177_v39 }
  0x10   : > { %v168_v11 = vpack.c.bf16 %v154_v8, %v153_v6  ;;  %v169_v12 = vpack.c.bf16 %v156_v10, %v155_v9  ;;  %v157_v14 = vld [vmem:[%s1079_s21 + $0x30] sm:$0xff]  ;;  %v158_v15 = vld [vmem:[%s1079_s21 + $0x38] sm:$0xff]  ;;  %v159_v16 = vld [vmem:[%s1079_s21 + $0x40] sm:$0xff] }
  0x11   : > { %894 = vmatprep.mubr.msk.bf16.mxu0 %vm186_vm0, %v167_v7  ;;  %v160_v17 = vld [vmem:[%s1079_s21 + $0x48] sm:$0xff]  ;;  %v170_v19 = vpack.c.bf16 %v158_v15, %v157_v14  ;;  %v161_v21 = vld [vmem:[%s1079_s21 + $0x50] sm:$0xff]  ;;  %v162_v22 = vld [vmem:[%s1079_s21 + $0x58] sm:$0xff] }
  0x12   : > { %913 = vmatpush3.bf16.msra.mxu1 %v984_v2  ;;  %895 = vmatmul.mubr.msk.bf16.vlgmr.msra.gmra.mxu0 %vm186_vm0, %v168_v11  ;;  %v171_v20 = vpack.c.bf16 %v160_v17, %v159_v16  ;;  %v163_v23 = vld [vmem:[%s1079_s21 + $0x60] sm:$0xff]  ;;  %v164_v24 = vld [vmem:[%s1079_s21 + $0x68] sm:$0xff]  ;;  %v172_v25 = vpack.c.bf16 %v162_v22, %v161_v21  ;;  %v165_v27 = vld [vmem:[%s1079_s21 + $0x70] sm:$0xff] }
  0x13   : > { %914 = vmatprep.subr.bf16.mxu1 %v985_v3  ;;  %898 = vmatprep.mubr.msk.bf16.mxu0 %vm186_vm0, %v169_v12  ;;  %v173_v26 = vpack.c.bf16 %v164_v24, %v163_v23  ;;  %v166_v28 = vld [vmem:[%s1079_s21 + $0x78] sm:$0xff]  ;;  %v991_v33 = vld [vmem:[%s1223_s1 + $0xc8] sm:$0xff]   ;;  %v992_v34 = vld [vmem:[%s1223_s1 + $0xc0] sm:$0xff]  }
  0x14   : > { %v174_v29 = vpack.c.bf16 %v166_v28, %v165_v27  ;;  %942 = vmatprep.subr.bf16.mxu0 %v991_v33  ;;  %v993_v35 = vld [vmem:[%s1223_s1 + $0xb8] sm:$0xff]   ;;  %v994_v36 = vld [vmem:[%s1223_s1 + $0xb0] sm:$0xff]   ;;  %v995_v37 = vld [vmem:[%s1223_s1 + $0xa8] sm:$0xff]  }
  0x15   : > { %943 = vmatpush3.bf16.msra.mxu0 %v991_v33  ;;  %v1141_v40 = vld [vmem:[%s1223_s1 + $0x40] ss:$72 sps:$4 sm:$0xff]   ;;  %v998_v38 = vld [vmem:[%s1223_s1 + $0x90] sm:$0xff]  }
  0x16   : > { %915 = vmatpush3.bf16.msra.mxu1 %v985_v3  ;;  %944 = vmatprep.subr.bf16.mxu0 %v992_v34  ;;  %v175_v41 = vunpack.c.l.bf16 %v1141_v40  ;;  %v350_v39 = vunpack.c.h.bf16 %v1141_v40 }
  0x17   : > { %916 = vmatprep.subr.bf16.mxu1 %v986_v13 }
  0x18   : > { %v179_v44 = vrot.slane %v175_v41, %v1144_v42 }
  0x19   : > { %945 = vmatpush3.bf16.msra.mxu0 %v992_v34 }
  0x1a   : > { %917 = vmatpush3.bf16.msra.mxu1 %v986_v13  ;;  %899 = vmatmul.mubr.msk.bf16.gmra.mxu0 %vm186_vm0, %v170_v19 }
  0x1b   : > { %918 = vmatprep.subr.bf16.mxu1 %v987_v18  ;;  %902 = vmatprep.mubr.msk.bf16.mxu0 %vm186_vm0, %v171_v20 }
  0x1c   : > { %946 = vmatprep.subr.bf16.mxu0 %v993_v35 }
  0x1d   : > { %947 = vmatpush3.bf16.msra.mxu0 %v993_v35 }
  0x1e   : > { %919 = vmatpush3.bf16.msra.mxu1 %v987_v18  ;;  %948 = vmatprep.subr.bf16.mxu0 %v994_v36 }
  0x1f   : > { %920 = vmatprep.subr.bf16.mxu1 %v988_v30 }
  0x21   : > { %949 = vmatpush3.bf16.msra.mxu0 %v994_v36  ;;  %v996_v36 = vld [vmem:[%s1223_s1 + $0xa0] sm:$0xff]  }
  0x22   : > { %903 = vmatmul.mubr.msk.bf16.gmra.mxu0 %vm186_vm0, %v172_v25  ;;  %921 = vmatpush3.bf16.msra.mxu1 %v988_v30 }
  0x23   : > { %906 = vmatprep.mubr.msk.bf16.mxu0 %vm186_vm0, %v173_v26  ;;  %922 = vmatprep.subr.bf16.mxu1 %v989_v31 }
  0x24   : > { %950 = vmatprep.subr.bf16.mxu0 %v995_v37 }
  0x25   : > { %951 = vmatpush3.bf16.msra.mxu0 %v995_v37  ;;  %v997_v37 = vld [vmem:[%s1223_s1 + $0x98] sm:$0xff]  }
  0x26   : > { %923 = vmatpush3.bf16.msra.mxu1 %v989_v31  ;;  %952 = vmatprep.subr.bf16.mxu0 %v996_v36 }
  0x27   : > { %924 = vmatprep.subr.bf16.mxu1 %v990_v32 }
  0x29   : > { %953 = vmatpush3.bf16.msra.mxu0 %v996_v36 }
  0x2a   : > { %907 = vmatmul.mubr.msk.bf16.gmra.mxu0 %vm186_vm0, %v174_v29  ;;  %925 = vmatpush3.bf16.msra.mxu1 %v990_v32 }
  0x2b   : > { %954 = vmatprep.subr.bf16.mxu0 %v997_v37 }
  0x2d   : > { %955 = vmatpush3.bf16.msra.mxu0 %v997_v37 }
  0x2e   : > { %956 = vmatprep.subr.bf16.mxu0 %v998_v38 }
  0x31   : > { %957 = vmatpush3.bf16.msra.mxu0 %v998_v38 }
  0xd2   : > { %v896_v43 = vpop.f32.mrf.mxu0 }
  0xd3   : > { %v254_v49 = vadd.f32 %v896_v43, %v179_v44  ;;  %v354_v43 = vrot.slane %v350_v39, %v1144_v42 }
  0xd4   : > { %v245_v45 = vpop.f32.mrf.mxu0 }
  0xd5   : > { %v246_v47 = vadd.f32 %v245_v45, %v179_v44  ;;  %v310_v56 = vmax.f32 %v254_v49, 0.0 }
  0xd6   : > { %v897_v46 = vpop.f32.mrf.mxu0 }
  0xd7   : > { %v257_v48 = vadd.f32 %v897_v46, %v179_v44  ;;  %v308_v54 = vmax.f32 %v246_v47, 0.0 }
  0xd8   : > { %v248_v50 = vpop.f32.mrf.mxu0 }
  0xd9   : > { %v249_v51 = vadd.f32 %v248_v50, %v179_v44  ;;  %v311_v52 = vmax.f32 %v257_v48, 0.0 }
  0xda   : > { %v900_v53 = vpop.f32.mrf.mxu0 }
  0xdb   : > { %v309_v55 = vmax.f32 %v249_v51, 0.0  ;;  %v343_v59 = vpack.c.bf16 %v311_v52, %v310_v56  ;;  %v270_v63 = vadd.f32 %v900_v53, %v179_v44 }
  0xdc   : > { %v261_v57 = vpop.f32.mrf.mxu0 }
  0xdd   : > { %v342_v58 = vpack.c.bf16 %v309_v55, %v308_v54  ;;  %v262_v61 = vadd.f32 %v261_v57, %v179_v44  ;;  %v314_v6 = vmax.f32 %v270_v63, 0.0 }
  0xde   : > { %v901_v60 = vpop.f32.mrf.mxu0 }
  0xdf   : > { %v273_v62 = vadd.f32 %v901_v60, %v179_v44  ;;  %926 = vmatprep.mubr.bf16.mxu1 %v342_v58  ;;  %v312_v4 = vmax.f32 %v262_v61, 0.0 }
  0xe0   : > { %v264_v0 = vpop.f32.mrf.mxu0  ;;  %927 = vmatmul.mubr.bf16.vlgmr.msra.gmra.mxu1 %v343_v59 }
  0xe1   : > { %v265_v1 = vadd.f32 %v264_v0, %v179_v44  ;;  %v315_v2 = vmax.f32 %v273_v62, 0.0 }
  0xe2   : > { %v904_v3 = vpop.f32.mrf.mxu0 }
  0xe3   : > { %v313_v5 = vmax.f32 %v265_v1, 0.0  ;;  %v345_v9 = vpack.c.bf16 %v315_v2, %v314_v6  ;;  %v286_v13 = vadd.f32 %v904_v3, %v179_v44 }
  0xe4   : > { %v277_v7 = vpop.f32.mrf.mxu0 }
  0xe5   : > { %v344_v8 = vpack.c.bf16 %v313_v5, %v312_v4  ;;  %v278_v11 = vadd.f32 %v277_v7, %v179_v44  ;;  %v318_v20 = vmax.f32 %v286_v13, 0.0 }
  0xe6   : > { %v905_v10 = vpop.f32.mrf.mxu0 }
  0xe7   : > { %v289_v12 = vadd.f32 %v905_v10, %v179_v44  ;;  %930 = vmatprep.mubr.bf16.mxu1 %v344_v8  ;;  %v316_v18 = vmax.f32 %v278_v11, 0.0 }
  0xe8   : > { %v280_v14 = vpop.f32.mrf.mxu0  ;;  %931 = vmatmul.mubr.bf16.gmra.mxu1 %v345_v9 }
  0xe9   : > { %v281_v15 = vadd.f32 %v280_v14, %v179_v44  ;;  %v319_v16 = vmax.f32 %v289_v12, 0.0 }
  0xea   : > { %v908_v17 = vpop.f32.mrf.mxu0 }
  0xeb   : > { %v317_v19 = vmax.f32 %v281_v15, 0.0  ;;  %v347_v23 = vpack.c.bf16 %v319_v16, %v318_v20  ;;  %v302_v27 = vadd.f32 %v908_v17, %v179_v44 }
  0xec   : > { %v293_v21 = vpop.f32.mrf.mxu0 }
  0xed   : > { %v346_v22 = vpack.c.bf16 %v317_v19, %v316_v18  ;;  %v294_v25 = vadd.f32 %v293_v21, %v179_v44  ;;  %v322_v33 = vmax.f32 %v302_v27, 0.0 }
  0xee   : > { %v909_v24 = vpop.f32.mrf.mxu0 }
  0xef   : > { %v305_v26 = vadd.f32 %v909_v24, %v179_v44  ;;  %934 = vmatprep.mubr.bf16.mxu1 %v346_v22  ;;  %v320_v31 = vmax.f32 %v294_v25, 0.0 }
  0xf0   : > { %v296_v28 = vpop.f32.mrf.mxu0  ;;  %935 = vmatmul.mubr.bf16.gmra.mxu1 %v347_v23 }
  0xf1   : > { %v297_v29 = vadd.f32 %v296_v28, %v179_v44  ;;  %v323_v30 = vmax.f32 %v305_v26, 0.0 }
  0xf3   : > { %v321_v32 = vmax.f32 %v297_v29, 0.0  ;;  %v349_v35 = vpack.c.bf16 %v323_v30, %v322_v33 }
  0xf5   : > { %v348_v34 = vpack.c.bf16 %v321_v32, %v320_v31 }
  0xf7   : > { %938 = vmatprep.mubr.bf16.mxu1 %v348_v34  ;;  %v840_v34 = vld [vmem:[%s1223_s1 + $0xd0] sm:$0xf] }
  0xf8   : > { %939 = vmatmul.mubr.bf16.gmra.mxu1 %v349_v35  ;;  %v542_v35 = vunpack.c.l.bf16 %v840_v34 }
  0xfa   : > { %v1162_v36 = vrot.slane %v542_v35, %v1144_v42 }
 0x1a0   : > { %v928_v41 = vpop.f32.mrf.mxu1 }
 0x1a1   : > { %v446_v48 = vadd.f32 %v928_v41, %v354_v43 }
 0x1a2   : > { %v437_v44 = vpop.f32.mrf.mxu1 }
 0x1a3   : > { %v438_v46 = vadd.f32 %v437_v44, %v354_v43  ;;  %v502_v55 = vmax.f32 %v446_v48, 0.0 }
 0x1a4   : > { %v929_v45 = vpop.f32.mrf.mxu1 }
 0x1a5   : > { %v449_v47 = vadd.f32 %v929_v45, %v354_v43  ;;  %v500_v53 = vmax.f32 %v438_v46, 0.0 }
 0x1a6   : > { %v440_v49 = vpop.f32.mrf.mxu1 }
 0x1a7   : > { %v441_v50 = vadd.f32 %v440_v49, %v354_v43  ;;  %v503_v51 = vmax.f32 %v449_v47, 0.0 }
 0x1a8   : > { %v932_v52 = vpop.f32.mrf.mxu1 }
 0x1a9   : > { %v501_v54 = vmax.f32 %v441_v50, 0.0  ;;  %v535_v58 = vpack.c.bf16 %v503_v51, %v502_v55  ;;  %v462_v61 = vadd.f32 %v932_v52, %v354_v43 }
 0x1aa   : > { %v453_v56 = vpop.f32.mrf.mxu1 }
 0x1ab   : > { %v534_v57 = vpack.c.bf16 %v501_v54, %v500_v53  ;;  %v454_v40 = vadd.f32 %v453_v56, %v354_v43  ;;  %v506_v4 = vmax.f32 %v462_v61, 0.0 }
 0x1ac   : > { %v933_v59 = vpop.f32.mrf.mxu1 }
 0x1ad   : > { %v465_v60 = vadd.f32 %v933_v59, %v354_v43  ;;  %958 = vmatprep.mubr.bf16.mxu0 %v534_v57  ;;  %v504_v2 = vmax.f32 %v454_v40, 0.0 }
 0x1ae   : > { %v456_v62 = vpop.f32.mrf.mxu1  ;;  %959 = vmatmul.mubr.bf16.vlgmr.msra.gmra.mxu0 %v535_v58 }
 0x1af   : > { %v457_v63 = vadd.f32 %v456_v62, %v354_v43  ;;  %v507_v0 = vmax.f32 %v465_v60, 0.0 }
 0x1b0   : > { %v936_v1 = vpop.f32.mrf.mxu1 }
 0x1b1   : > { %v505_v3 = vmax.f32 %v457_v63, 0.0  ;;  %v537_v7 = vpack.c.bf16 %v507_v0, %v506_v4  ;;  %v478_v11 = vadd.f32 %v936_v1, %v354_v43 }
 0x1b2   : > { %v469_v5 = vpop.f32.mrf.mxu1 }
 0x1b3   : > { %v536_v6 = vpack.c.bf16 %v505_v3, %v504_v2  ;;  %v470_v9 = vadd.f32 %v469_v5, %v354_v43  ;;  %v510_v18 = vmax.f32 %v478_v11, 0.0 }
 0x1b4   : > { %v937_v8 = vpop.f32.mrf.mxu1 }
 0x1b5   : > { %v481_v10 = vadd.f32 %v937_v8, %v354_v43  ;;  %962 = vmatprep.mubr.bf16.mxu0 %v536_v6  ;;  %v508_v16 = vmax.f32 %v470_v9, 0.0 }
 0x1b6   : > { %v472_v12 = vpop.f32.mrf.mxu1  ;;  %963 = vmatmul.mubr.bf16.gmra.mxu0 %v537_v7 }
 0x1b7   : > { %v473_v13 = vadd.f32 %v472_v12, %v354_v43  ;;  %v511_v14 = vmax.f32 %v481_v10, 0.0 }
 0x1b8   : > { %v940_v15 = vpop.f32.mrf.mxu1 }
 0x1b9   : > { %v509_v17 = vmax.f32 %v473_v13, 0.0  ;;  %v539_v21 = vpack.c.bf16 %v511_v14, %v510_v18  ;;  %v494_v25 = vadd.f32 %v940_v15, %v354_v43 }
 0x1ba   : > { %v485_v19 = vpop.f32.mrf.mxu1 }
 0x1bb   : > { %v538_v20 = vpack.c.bf16 %v509_v17, %v508_v16  ;;  %v486_v23 = vadd.f32 %v485_v19, %v354_v43  ;;  %v514_v31 = vmax.f32 %v494_v25, 0.0 }
 0x1bc   : > { %v941_v22 = vpop.f32.mrf.mxu1 }
 0x1bd   : > { %v497_v24 = vadd.f32 %v941_v22, %v354_v43  ;;  %966 = vmatprep.mubr.bf16.mxu0 %v538_v20  ;;  %v512_v29 = vmax.f32 %v486_v23, 0.0 }
 0x1be   : > { %v488_v26 = vpop.f32.mrf.mxu1  ;;  %967 = vmatmul.mubr.bf16.gmra.mxu0 %v539_v21 }
 0x1bf   : > { %v489_v27 = vadd.f32 %v488_v26, %v354_v43  ;;  %v515_v28 = vmax.f32 %v497_v24, 0.0 }
 0x1c1   : > { %v513_v30 = vmax.f32 %v489_v27, 0.0  ;;  %v541_v33 = vpack.c.bf16 %v515_v28, %v514_v31 }
 0x1c3   : > { %v540_v32 = vpack.c.bf16 %v513_v30, %v512_v29 }
 0x1c5   : > { %970 = vmatprep.mubr.bf16.mxu0 %v540_v32 }
 0x1c6   : > { %971 = vmatmul.mubr.bf16.gmra.mxu0 %v541_v33 }
 0x26e   : > { %v960_v37 = vpop.f32.mrf.mxu0 }
 0x26f   : > { %v638_v38 = vadd.f32 %v960_v37, %v1162_v36 }
 0x270   : > { %v629_v39 = vpop.f32.mrf.mxu0 }
 0x271   : > { %999 = vtanh.f32 %v638_v38  ;;  %v630_v41 = vadd.f32 %v629_v39, %v1162_v36 }
 0x272   : > { %v961_v43 = vpop.f32.mrf.mxu0 }
 0x273   : > { %1001 = vtanh.f32 %v630_v41  ;;  %v641_v44 = vadd.f32 %v961_v43, %v1162_v36 }
 0x274   : > { %v632_v45 = vpop.f32.mrf.mxu0 }
 0x275   : > { %1003 = vtanh.f32 %v641_v44  ;;  %v633_v46 = vadd.f32 %v632_v45, %v1162_v36 }
 0x276   : > { %v964_v47 = vpop.f32.mrf.mxu0 }
 0x277   : > { %1005 = vtanh.f32 %v633_v46  ;;  %v654_v42 = vadd.f32 %v964_v47, %v1162_v36 }
 0x278   : > { %v645_v48 = vpop.f32.mrf.mxu0 }
 0x279   : > { %1007 = vtanh.f32 %v654_v42  ;;  %v646_v49 = vadd.f32 %v645_v48, %v1162_v36 }
 0x27a   : > { %v965_v50 = vpop.f32.mrf.mxu0 }
 0x27b   : > { %1009 = vtanh.f32 %v646_v49  ;;  %v657_v51 = vadd.f32 %v965_v50, %v1162_v36 }
 0x27c   : > { %v648_v52 = vpop.f32.mrf.mxu0 }
 0x27d   : > { %1011 = vtanh.f32 %v657_v51  ;;  %v649_v53 = vadd.f32 %v648_v52, %v1162_v36 }
 0x27e   : > { %v1000_v54 = vpop.eup %999  ;;  %v968_v55 = vpop.f32.mrf.mxu0 }
 0x27f   : > { %711 = vst.msk [vmem:[%s1176_s3 + $0x10] sm:$0xff] %vm708_vm1, %v1000_v54  ;;  %1013 = vtanh.f32 %v649_v53  ;;  %v670_v56 = vadd.f32 %v968_v55, %v1162_v36 }
 0x280   : > { %v1002_v57 = vpop.eup %1001  ;;  %v661_v58 = vpop.f32.mrf.mxu0 }
 0x281   : > { %709 = vst.msk [vmem:[%s1176_s3] sm:$0xff] %vm708_vm1, %v1002_v57  ;;  %1015 = vtanh.f32 %v670_v56  ;;  %v662_v59 = vadd.f32 %v661_v58, %v1162_v36 }
 0x282   : > { %v1004_v40 = vpop.eup %1003  ;;  %v969_v60 = vpop.f32.mrf.mxu0 }
 0x283   : > { %712 = vst.msk [vmem:[%s1176_s3 + $0x18] sm:$0xff] %vm708_vm1, %v1004_v40  ;;  %1017 = vtanh.f32 %v662_v59  ;;  %v673_v61 = vadd.f32 %v969_v60, %v1162_v36 }
 0x284   : > { %v1006_v62 = vpop.eup %1005  ;;  %v664_v63 = vpop.f32.mrf.mxu0 }
 0x285   : > { %710 = vst.msk [vmem:[%s1176_s3 + $0x8] sm:$0xff] %vm708_vm1, %v1006_v62  ;;  %1019 = vtanh.f32 %v673_v61  ;;  %v665_v0 = vadd.f32 %v664_v63, %v1162_v36 }
 0x286   : > { %v1008_v1 = vpop.eup %1007  ;;  %v972_v2 = vpop.f32.mrf.mxu0 }
 0x287   : > { %715 = vst.msk [vmem:[%s1176_s3 + $0x30] sm:$0xff] %vm708_vm1, %v1008_v1  ;;  %1021 = vtanh.f32 %v665_v0  ;;  %v686_v3 = vadd.f32 %v972_v2, %v1162_v36 }
 0x288   : > { %v1010_v4 = vpop.eup %1009  ;;  %v677_v5 = vpop.f32.mrf.mxu0 }
 0x289   : > { %713 = vst.msk [vmem:[%s1176_s3 + $0x20] sm:$0xff] %vm708_vm1, %v1010_v4  ;;  %1023 = vtanh.f32 %v686_v3  ;;  %v678_v6 = vadd.f32 %v677_v5, %v1162_v36 }
 0x28a   : > { %v1012_v7 = vpop.eup %1011  ;;  %v973_v8 = vpop.f32.mrf.mxu0 }
 0x28b   : > { %716 = vst.msk [vmem:[%s1176_s3 + $0x38] sm:$0xff] %vm708_vm1, %v1012_v7  ;;  %1025 = vtanh.f32 %v678_v6  ;;  %v689_v9 = vadd.f32 %v973_v8, %v1162_v36 }
 0x28c   : > { %v1014_v10 = vpop.eup %1013  ;;  %v680_v11 = vpop.f32.mrf.mxu0 }
 0x28d   : > { %714 = vst.msk [vmem:[%s1176_s3 + $0x28] sm:$0xff] %vm708_vm1, %v1014_v10  ;;  %1027 = vtanh.f32 %v689_v9  ;;  %v681_v12 = vadd.f32 %v680_v11, %v1162_v36 }
 0x28e   : > { %v1016_v13 = vpop.eup %1015 }
 0x28f   : > { %719 = vst.msk [vmem:[%s1176_s3 + $0x50] sm:$0xff] %vm708_vm1, %v1016_v13  ;;  %1029 = vtanh.f32 %v681_v12 }
 0x290   : > { %v1018_v14 = vpop.eup %1017 }
 0x291   : > { %717 = vst.msk [vmem:[%s1176_s3 + $0x40] sm:$0xff] %vm708_vm1, %v1018_v14 }
 0x292   : > { %v1020_v15 = vpop.eup %1019 }
 0x293   : > { %720 = vst.msk [vmem:[%s1176_s3 + $0x58] sm:$0xff] %vm708_vm1, %v1020_v15 }
 0x294   : > { %v1022_v16 = vpop.eup %1021 }
 0x295   : > { %718 = vst.msk [vmem:[%s1176_s3 + $0x48] sm:$0xff] %vm708_vm1, %v1022_v16 }
 0x296   : > { %v1024_v17 = vpop.eup %1023 }
 0x297   : > { %723 = vst.msk [vmem:[%s1176_s3 + $0x70] sm:$0xff] %vm708_vm1, %v1024_v17 }
 0x298   : > { %v1026_v18 = vpop.eup %1025 }
 0x299   : > { %721 = vst.msk [vmem:[%s1176_s3 + $0x60] sm:$0xff] %vm708_vm1, %v1026_v18 }
 0x29a   : > { %v1028_v19 = vpop.eup %1027 }
 0x29b   : > { %724 = vst.msk [vmem:[%s1176_s3 + $0x78] sm:$0xff] %vm708_vm1, %v1028_v19 }
 0x29c   : > { %v1030_v20 = vpop.eup %1029 }
 0x29d   : > { %722 = vst.msk [vmem:[%s1176_s3 + $0x68] sm:$0xff] %vm708_vm1, %v1030_v20 }
 0x29e PF: > { %s12_s9 = sadd.s32 1, %s1037_s9  }
 0x29f   : > { %p9_p4 = scmp.ge.s32.totalorder %s12_s9, 4  }
 0x2a1   :  { %11 = sbr.rel (!%p9_p4) target bundleno = 1 (0x1), region = 60 }

</bundles_post_ra>
